<compile_context>
chip_gen: v6e
topology: v6e:2x2x1
jax: 0.10.0
libtpu: 0.0.40
codegen_flags: <defaults>
</compile_context>

<pallas_src>
import math

import jax
import jax.numpy as jnp
from jax.experimental import pallas as pl
from jax.experimental.pallas import tpu as pltpu


def _round_up(x, m):
    return ((x + m - 1) // m) * m


def _critic_kernel(x_ref, w1_ref, b1_ref, w2_ref, b2_ref, w3_ref, b3_ref, o_ref):
    # x_ref: (S+A, TB) feature-major (batch on lanes). Weights stay in torch
    # (out_features, in_features) layout, so each layer is W @ h -- the native
    # MXU (M, K) @ (K, N) orientation. All accumulation is f32.

    # Layer 1: single fused matmul over the concatenated [state; action] features.
    h1 = jnp.dot(w1_ref[...], x_ref[...],
                 preferred_element_type=jnp.float32) + b1_ref[...]
    h1 = jnp.maximum(h1, 0.0)

    # Layer 2: dominant (H2, H1) @ (H1, TB) matmul. MXU inputs follow w2's
    # dtype (bf16 by default, cast host-side); elementwise ops stay f32.
    h2 = jnp.dot(w2_ref[...], h1.astype(w2_ref.dtype),
                 preferred_element_type=jnp.float32) + b2_ref[...]
    h2 = jnp.maximum(h2, 0.0)

    # Head: (1, H2) @ (H2, TB) -> lane-dense (1, TB) slab; b3 is an SMEM scalar.
    q = jnp.dot(w3_ref[...], h2, preferred_element_type=jnp.float32) + b3_ref[0]
    o_ref[...] = q.astype(o_ref.dtype)


def critic_forward(state, action, params, *, block_batch=4096):
    """Q(s, a) forward pass. Returns (B, 1) float32.

    params: w1 (H1, S+A), b1 (H1, 1), w2 (H2, H1) [f32 or bf16], b2 (H2, 1),
            w3 (1, H2), b3 (1,)   -- torch (out, in) weight layout.
    """
    b, s_dim = state.shape
    a_dim = action.shape[1]
    in_dim = s_dim + a_dim
    h1_dim = params["w1"].shape[0]
    h2_dim = params["w2"].shape[0]

    # Feature-major (S+A, B) input: contiguous lane-dense rows, no lane
    # padding, and layer 1 runs as one standard-contraction matmul.
    x = jnp.concatenate(
        [state.astype(jnp.float32).T, action.astype(jnp.float32).T], axis=0)

    # Batch tile: multiple of 128 (lane-dense output). Large tiles amortize
    # the ~0.35 us per-grid-step overhead; aim for >= 2 grid steps whenever
    # the batch allows so v7x's two TensorCores both get work, capped at
    # block_batch to bound per-step VMEM.
    b_pad128 = _round_up(b, 128)
    tb_cap = _round_up(block_batch, 128)
    if b_pad128 <= 128:
        tb = 128
    else:
        tb = min(tb_cap, _round_up(pl.cdiv(b_pad128, 2), 128))
    b_pad = _round_up(b, tb)
    if b_pad != b:
        x = jnp.pad(x, ((0, 0), (0, b_pad - b)))
    grid = (b_pad // tb,)

    w2 = params["w2"]
    flops = 2 * b_pad * (h1_dim * in_dim + h2_dim * h1_dim + h2_dim)
    bytes_accessed = (
        4 * b_pad * in_dim                                     # inputs
        + 4 * (h1_dim * in_dim + h1_dim)                       # layer-1 params
        + w2.dtype.itemsize * h2_dim * h1_dim + 4 * h2_dim     # layer-2 params
        + 4 * (h2_dim + 1)                                     # head params
        + 4 * b_pad                                            # output
    )

    # Per-step VMEM estimate (inputs/outputs double-buffered, f32 activations,
    # bf16 copy of h1, resident params + compiler scratch slack).
    in_dim_pad = _round_up(in_dim, 8)
    vmem_est = (
        2 * in_dim_pad * tb * 4
        + 2 * 8 * tb * 4
        + 2 * h1_dim * tb * 4
        + h1_dim * tb * 2
        + 4 * 1024 * 1024
    )
    vmem_limit = int(min(64 * 1024 * 1024,
                         max(32 * 1024 * 1024, (vmem_est * 3) // 2)))

    out = pl.pallas_call(
        _critic_kernel,
        out_shape=jax.ShapeDtypeStruct((1, b_pad), jnp.float32),
        grid_spec=pltpu.PrefetchScalarGridSpec(
            num_scalar_prefetch=0,
            grid=grid,
            in_specs=[
                pl.BlockSpec((in_dim, tb), lambda i: (0, i)),       # x tile
                pl.BlockSpec((h1_dim, in_dim), lambda i: (0, 0)),   # w1 (resident)
                pl.BlockSpec((h1_dim, 1), lambda i: (0, 0)),        # b1 (resident)
                pl.BlockSpec((h2_dim, h1_dim), lambda i: (0, 0)),   # w2 (resident)
                pl.BlockSpec((h2_dim, 1), lambda i: (0, 0)),        # b2 (resident)
                pl.BlockSpec((1, h2_dim), lambda i: (0, 0)),        # w3 (resident)
                pl.BlockSpec(memory_space=pltpu.MemorySpace.SMEM),  # b3 scalar
            ],
            out_specs=pl.BlockSpec((1, tb), lambda i: (0, i)),
        ),
        compiler_params=pltpu.CompilerParams(
            dimension_semantics=("parallel",),
            vmem_limit_bytes=vmem_limit,
        ),
        cost_estimate=pl.CostEstimate(
            flops=flops, transcendentals=0, bytes_accessed=bytes_accessed),
    )(
        x, params["w1"], params["b1"], w2, params["b2"],
        params["w3"], params["b3"],
    )

    # (1, b_pad) lane-dense slab -> (B, 1) column expected by the caller.
    return out[:, :b].reshape(b, 1)


def _xavier_uniform(key, fan_out, fan_in):
    # Matches torch.nn.init.xavier_uniform_ with gain=1; torch (out, in) layout.
    limit = math.sqrt(6.0 / (fan_in + fan_out))
    return jax.random.uniform(key, (fan_out, fan_in), jnp.float32, -limit, limit)


def init_critic_params(key, state_dim, action_dim, hidden_dim=(256, 256),
                       *, layer2_dtype=jnp.bfloat16):
    k1, k2, k3 = jax.random.split(key, 3)
    h0, h1 = hidden_dim
    return {
        "w1": _xavier_uniform(k1, h0, state_dim + action_dim),    # (H1, S+A)
        "b1": jnp.zeros((h0, 1), jnp.float32),
        "w2": _xavier_uniform(k2, h1, h0).astype(layer2_dtype),   # (H2, H1)
        "b2": jnp.zeros((h1, 1), jnp.float32),
        "w3": _xavier_uniform(k3, 1, h1),                         # (1, H2)
        "b3": jnp.zeros((1,), jnp.float32),
    }


def critic_forward_ref(state, action, params):
    # Pure-JAX reference for verification (matches the PyTorch forward).
    x = jnp.concatenate([state, action], axis=-1).astype(jnp.float32)
    h = jnp.maximum(x @ params["w1"].T + params["b1"][:, 0], 0.0)
    h = jnp.maximum(
        h @ params["w2"].astype(jnp.float32).T + params["b2"][:, 0], 0.0)
    return h @ params["w3"].T + params["b3"]


# TODO(synk): cal_loss (MSE to TD targets) is training-side code, not part of
# the forward pass; it stays in plain JAX if needed.

if __name__ == "__main__":
    key = jax.random.PRNGKey(0)
    k_state, k_action, k_params = jax.random.split(key, 3)

    batch, state_dim, action_dim = 8, 8, 4
    state = jax.random.normal(k_state, (batch, state_dim), jnp.float32)
    action = jax.random.normal(k_action, (batch, action_dim), jnp.float32)

    # 1) f32 layer-2 weights: bit-faithful check against the pure-JAX reference.
    params_f32 = init_critic_params(
        k_params, state_dim, action_dim, hidden_dim=(256, 256),
        layer2_dtype=jnp.float32)
    out_f32 = jax.block_until_ready(critic_forward(state, action, params_f32))
    ref = critic_forward_ref(state, action, params_f32)
    assert out_f32.shape == (batch, 1), out_f32.shape
    assert jnp.allclose(out_f32, ref, atol=1e-4, rtol=1e-4), (out_f32, ref)

    # 2) bf16 layer-2 weights (default fast path on v6e/v7x): loose tolerance,
    #    accumulation stays f32.
    params_bf16 = init_critic_params(
        k_params, state_dim, action_dim, hidden_dim=(256, 256),
        layer2_dtype=jnp.bfloat16)
    out_bf16 = jax.block_until_ready(critic_forward(state, action, params_bf16))
    assert out_bf16.shape == (batch, 1), out_bf16.shape
    assert jnp.allclose(out_bf16, ref, atol=3e-2, rtol=3e-2), (out_bf16, ref)

    print("KERNEL_OK")
</pallas_src>

<mosaic_0001>
module attributes {stable_mosaic.version = 11 : i64} {
  func.func @_critic_kernel(%arg0: i32, %arg1: memref<12x128xf32, #tpu.memory_space<vmem>>, %arg2: memref<256x12xf32, #tpu.memory_space<vmem>>, %arg3: memref<256x1xf32, #tpu.memory_space<vmem>>, %arg4: memref<256x256xf32, #tpu.memory_space<vmem>>, %arg5: memref<256x1xf32, #tpu.memory_space<vmem>>, %arg6: memref<1x256xf32, #tpu.memory_space<vmem>>, %arg7: memref<1xf32, #tpu.memory_space<smem>>, %arg8: memref<1x128xf32, #tpu.memory_space<vmem>>) attributes {dimension_semantics = [#tpu.dimension_semantics<parallel>], iteration_bounds = array<i64: 1>, scalar_prefetch = 0 : i64, scratch_operands = 0 : i64, tpu.core_type = #tpu.core_type<tc>, window_params = [{transform_indices = @transform_0, window_bounds = array<i64: 12, 128>}, {pipeline_mode = #tpu.pipeline_mode<synchronous>, transform_indices = @transform_1, window_bounds = array<i64: 256, 12>}, {pipeline_mode = #tpu.pipeline_mode<synchronous>, transform_indices = @transform_2, window_bounds = array<i64: 256, 1>}, {pipeline_mode = #tpu.pipeline_mode<synchronous>, transform_indices = @transform_3, window_bounds = array<i64: 256, 256>}, {pipeline_mode = #tpu.pipeline_mode<synchronous>, transform_indices = @transform_4, window_bounds = array<i64: 256, 1>}, {pipeline_mode = #tpu.pipeline_mode<synchronous>, transform_indices = @transform_5, window_bounds = array<i64: 1, 256>}, {transform_indices = @transform_6, window_bounds = array<i64: 1>}, {transform_indices = @transform_7, window_bounds = array<i64: 1, 128>}]} {
    %c0 = arith.constant 0 : index
    %c0_0 = arith.constant 0 : index
    %0 = vector.load %arg2[%c0, %c0_0] : memref<256x12xf32, #tpu.memory_space<vmem>>, vector<256x12xf32>
    %c0_1 = arith.constant 0 : index
    %c0_2 = arith.constant 0 : index
    %1 = vector.load %arg1[%c0_1, %c0_2] : memref<12x128xf32, #tpu.memory_space<vmem>>, vector<12x128xf32>
    %cst = arith.constant dense<0.000000e+00> : vector<256x128xf32>
    %2 = tpu.matmul %0, %1, %cst {dimension_numbers = #tpu.dot_dimension_numbers<[1], [0], [0], [1], [0, 0, 1, 1], [], []>} : vector<256x12xf32>, vector<12x128xf32>, vector<256x128xf32> -> vector<256x128xf32>
    %c0_3 = arith.constant 0 : index
    %c0_4 = arith.constant 0 : index
    %3 = vector.load %arg3[%c0_3, %c0_4] : memref<256x1xf32, #tpu.memory_space<vmem>>, vector<256x1xf32>
    %4 = vector.broadcast %3 : vector<256x1xf32> to vector<256x128xf32>
    %5 = arith.addf %2, %4 : vector<256x128xf32>
    %cst_5 = arith.constant 0.000000e+00 : f32
    %6 = vector.broadcast %cst_5 : f32 to vector<256x128xf32>
    %7 = arith.maximumf %5, %6 : vector<256x128xf32>
    %c0_6 = arith.constant 0 : index
    %c0_7 = arith.constant 0 : index
    %8 = vector.load %arg4[%c0_6, %c0_7] : memref<256x256xf32, #tpu.memory_space<vmem>>, vector<256x256xf32>
    %cst_8 = arith.constant dense<0.000000e+00> : vector<256x128xf32>
    %9 = tpu.matmul %8, %7, %cst_8 {dimension_numbers = #tpu.dot_dimension_numbers<[1], [0], [0], [1], [0, 0, 1, 1], [], []>} : vector<256x256xf32>, vector<256x128xf32>, vector<256x128xf32> -> vector<256x128xf32>
    %c0_9 = arith.constant 0 : index
    %c0_10 = arith.constant 0 : index
    %10 = vector.load %arg5[%c0_9, %c0_10] : memref<256x1xf32, #tpu.memory_space<vmem>>, vector<256x1xf32>
    %11 = vector.broadcast %10 : vector<256x1xf32> to vector<256x128xf32>
    %12 = arith.addf %9, %11 : vector<256x128xf32>
    %cst_11 = arith.constant 0.000000e+00 : f32
    %13 = vector.broadcast %cst_11 : f32 to vector<256x128xf32>
    %14 = arith.maximumf %12, %13 : vector<256x128xf32>
    %c0_12 = arith.constant 0 : index
    %c0_13 = arith.constant 0 : index
    %15 = vector.load %arg6[%c0_12, %c0_13] : memref<1x256xf32, #tpu.memory_space<vmem>>, vector<1x256xf32>
    %cst_14 = arith.constant dense<0.000000e+00> : vector<1x128xf32>
    %16 = tpu.matmul %15, %14, %cst_14 {dimension_numbers = #tpu.dot_dimension_numbers<[1], [0], [0], [1], [0, 0, 1, 1], [], []>} : vector<1x256xf32>, vector<256x128xf32>, vector<1x128xf32> -> vector<1x128xf32>
    %c0_15 = arith.constant 0 : index
    %17 = memref.load %arg7[%c0_15] : memref<1xf32, #tpu.memory_space<smem>>
    %18 = vector.broadcast %17 : f32 to vector<1x128xf32>
    %19 = arith.addf %16, %18 : vector<1x128xf32>
    %c0_16 = arith.constant 0 : index
    %c0_17 = arith.constant 0 : index
    %20 = vector.load %arg8[%c0_16, %c0_17] : memref<1x128xf32, #tpu.memory_space<vmem>>, vector<1x128xf32>
    tpu.vector_store %arg8[%c0_16, %c0_17], %19 {strides = array<i32>} : memref<1x128xf32, #tpu.memory_space<vmem>>, vector<1x128xf32>,
    return
  }
  func.func @transform_0(%arg0: i32) -> (i32, i32) {
    %c0_i32 = arith.constant 0 : i32
    %c0_i32_0 = arith.constant 0 : i32
    return %c0_i32, %arg0 : i32, i32
  }
  func.func @transform_1(%arg0: i32) -> (i32, i32) {
    %c0_i32 = arith.constant 0 : i32
    %c0_i32_0 = arith.constant 0 : i32
    %c0_i32_1 = arith.constant 0 : i32
    return %c0_i32, %c0_i32_0 : i32, i32
  }
  func.func @transform_2(%arg0: i32) -> (i32, i32) {
    %c0_i32 = arith.constant 0 : i32
    %c0_i32_0 = arith.constant 0 : i32
    %c0_i32_1 = arith.constant 0 : i32
    return %c0_i32, %c0_i32_0 : i32, i32
  }
  func.func @transform_3(%arg0: i32) -> (i32, i32) {
    %c0_i32 = arith.constant 0 : i32
    %c0_i32_0 = arith.constant 0 : i32
    %c0_i32_1 = arith.constant 0 : i32
    return %c0_i32, %c0_i32_0 : i32, i32
  }
  func.func @transform_4(%arg0: i32) -> (i32, i32) {
    %c0_i32 = arith.constant 0 : i32
    %c0_i32_0 = arith.constant 0 : i32
    %c0_i32_1 = arith.constant 0 : i32
    return %c0_i32, %c0_i32_0 : i32, i32
  }
  func.func @transform_5(%arg0: i32) -> (i32, i32) {
    %c0_i32 = arith.constant 0 : i32
    %c0_i32_0 = arith.constant 0 : i32
    %c0_i32_1 = arith.constant 0 : i32
    return %c0_i32, %c0_i32_0 : i32, i32
  }
  func.func @transform_6(%arg0: i32) -> i32 {
    %c0_i32 = arith.constant 0 : i32
    %c0_i32_0 = arith.constant 0 : i32
    return %c0_i32 : i32
  }
  func.func @transform_7(%arg0: i32) -> (i32, i32) {
    %c0_i32 = arith.constant 0 : i32
    %c0_i32_0 = arith.constant 0 : i32
    return %c0_i32, %arg0 : i32, i32
  }
}

</mosaic_0001>

<bundles_post_ra>
// kernel: tpu_custom_call.1
= control target key start
LH: loop header
LB: loop body
LE: loop exit
PB: predicated region body
PF: predicated region fallthrough
CT: control target
= control target key end

     0   :  { %vm351_vm0 = vcmask 1043456   ;;  %v1469_v3 = vmov 0   ;;  %vm254_vm1 = vcmask 97280   ;;  %s2292_s0 = inlined_call_operand.vmem [shape: f32[12,128], index: 0, kind: input, shape index: {}]   ;;  %s2293_s1 = inlined_call_operand.vmem [shape: f32[256,12], index: 1, kind: input, shape index: {}]   ;;  %s2294_s2 = inlined_call_operand.vmem [shape: f32[256,1], index: 2, kind: input, shape index: {}]   ;;  %s2295_s3 = inlined_call_operand.vmem [shape: f32[256,256], index: 3, kind: input, shape index: {}]   ;;  %s2296_s4 = inlined_call_operand.vmem [shape: f32[256,1], index: 4, kind: input, shape index: {}]   ;;  %s2297_s5 = inlined_call_operand.vmem [shape: f32[1,256], index: 5, kind: input, shape index: {}]   ;;  %s2298_s6 = inlined_call_operand.<no memory space> [shape: f32[1], index: 6, kind: input, shape index: {}]   ;;  %s2299_s7 = inlined_call_operand.hbm [shape: f32[1,128], index: 7, kind: output, shape index: {}]  }
   0x1   :  { %v61_v0 = vld [vmem:[%s2292_s0 + $0x8] sm:$0xf]  ;;  %v77_v1 = vld [vmem:[%s2294_s2 + $0x78] sm:$0xff]  ;;  %1446 = vset.pattern.permute.xlu1 %v1469_v3  ;;  %1445 = vset.pattern.permute.xlu0 %v1469_v3  ;;  %v60_v4 = vld [vmem:[%s2292_s0] sm:$0xff] }
   0x2   :  { %v75_v2 = vld [vmem:[%s2294_s2 + $0x68] sm:$0xff]  ;;  %v28_v5 = vld [vmem:[%s2293_s1] sm:$0xff]  ;;  %1326 = vmatprep.subr.msk.mxu0 %vm351_vm0, %v61_v0  ;;  %171 = vperm.xlu0 %1445, %v77_v1   ;;  %v76_v7 = vld [vmem:[%s2294_s2 + $0x70] sm:$0xff] }
   0x3   :  { %161 = vperm.xlu1 %1446, %v75_v2   ;;  %1327 = vmatpush3.msk.msra.mxu0 %vm351_vm0, %v61_v0  ;;  %v29_v6 = vld [vmem:[%s2293_s1 + $0x8] sm:$0xff]  ;;  %v74_v8 = vld [vmem:[%s2294_s2 + $0x60] sm:$0xff]  ;;  %v30_v9 = vld [vmem:[%s2293_s1 + $0x10] sm:$0xff] }
   0x4   :  { %1328 = vmatprep.subr.mxu0 %v60_v4  ;;  %1330 = vmatprep.mubr.msk.f32.mxu0 %vm254_vm1, %v28_v5  ;;  %v31_v10 = vld [vmem:[%s2293_s1 + $0x18] sm:$0xff]  ;;  %v72_v12 = vld [vmem:[%s2294_s2 + $0x50] sm:$0xff]  ;;  %v32_v13 = vld [vmem:[%s2293_s1 + $0x20] sm:$0xff] }
   0x5   :  { %1329 = vmatpush3.msra.mxu0 %v60_v4  ;;  %v73_v11 = vld [vmem:[%s2294_s2 + $0x58] sm:$0xff]  ;;  %v33_v14 = vld [vmem:[%s2293_s1 + $0x28] sm:$0xff]  ;;  %v70_v16 = vld [vmem:[%s2294_s2 + $0x40] sm:$0xff] }
   0x6   :  { %1331 = vmatmul.mubr.msk.f32.vlgmr.msra.gmra.mxu0 %vm254_vm1, %v29_v6  ;;  %166 = vperm.xlu0 %1445, %v76_v7   ;;  %v71_v15 = vld [vmem:[%s2294_s2 + $0x48] sm:$0xff]  ;;  %v34_v17 = vld [vmem:[%s2293_s1 + $0x30] sm:$0xff]  ;;  %v35_v18 = vld [vmem:[%s2293_s1 + $0x38] sm:$0xff] }
   0x7   :  { %156 = vperm.xlu1 %1446, %v74_v8   ;;  %1333 = vmatprep.mubr.msk.f32.mxu0 %vm254_vm1, %v30_v9  ;;  %v69_v19 = vld [vmem:[%s2294_s2 + $0x38] sm:$0xff]  ;;  %v68_v20 = vld [vmem:[%s2294_s2 + $0x30] sm:$0xff]  ;;  %v36_v21 = vld [vmem:[%s2293_s1 + $0x40] sm:$0xff] }
   0x8   :  { %v37_v22 = vld [vmem:[%s2293_s1 + $0x48] sm:$0xff]  ;;  %v66_v24 = vld [vmem:[%s2294_s2 + $0x20] sm:$0xff]  ;;  %v38_v25 = vld [vmem:[%s2293_s1 + $0x50] sm:$0xff] }
   0x9   :  { %v67_v23 = vld [vmem:[%s2294_s2 + $0x28] sm:$0xff]  ;;  %v39_v26 = vld [vmem:[%s2293_s1 + $0x58] sm:$0xff]  ;;  %v64_v28 = vld [vmem:[%s2294_s2 + $0x10] sm:$0xff] }
   0xa   :  { %1334 = vmatmul.mubr.msk.f32.gmra.mxu0 %vm254_vm1, %v31_v10  ;;  %151 = vperm.xlu0 %1445, %v73_v11   ;;  %v65_v27 = vld [vmem:[%s2294_s2 + $0x18] sm:$0xff]  ;;  %v40_v29 = vld [vmem:[%s2293_s1 + $0x60] sm:$0xff]  ;;  %v41_v30 = vld [vmem:[%s2293_s1 + $0x68] sm:$0xff] }
   0xb   :  { %146 = vperm.xlu1 %1446, %v72_v12   ;;  %1336 = vmatprep.mubr.msk.f32.mxu0 %vm254_vm1, %v32_v13  ;;  %v63_v31 = vld [vmem:[%s2294_s2 + $0x8] sm:$0xff]  ;;  %v62_v32 = vld [vmem:[%s2294_s2] sm:$0xff]  ;;  %v42_v33 = vld [vmem:[%s2293_s1 + $0x70] sm:$0xff] }
   0xc   :  { %v43_v34 = vld [vmem:[%s2293_s1 + $0x78] sm:$0xff]  ;;  %v92_v36 = vld [vmem:[%s2294_s2 + $0xf0] sm:$0xff]  ;;  %v44_v37 = vld [vmem:[%s2293_s1 + $0x80] sm:$0xff] }
   0xd   :  { %v93_v35 = vld [vmem:[%s2294_s2 + $0xf8] sm:$0xff] }
   0xe   :  { %1337 = vmatmul.mubr.msk.f32.gmra.mxu0 %vm254_vm1, %v33_v14  ;;  %141 = vperm.xlu0 %1445, %v71_v15  }
   0xf   :  { %136 = vperm.xlu1 %1446, %v70_v16   ;;  %1339 = vmatprep.mubr.msk.f32.mxu0 %vm254_vm1, %v34_v17 }
  0x12   :  { %1340 = vmatmul.mubr.msk.f32.gmra.mxu0 %vm254_vm1, %v35_v18  ;;  %131 = vperm.xlu0 %1445, %v69_v19  }
  0x13   :  { %126 = vperm.xlu1 %1446, %v68_v20   ;;  %1342 = vmatprep.mubr.msk.f32.mxu0 %vm254_vm1, %v36_v21 }
  0x16   :  { %1343 = vmatmul.mubr.msk.f32.gmra.mxu0 %vm254_vm1, %v37_v22  ;;  %121 = vperm.xlu0 %1445, %v67_v23  }
  0x17   :  { %116 = vperm.xlu1 %1446, %v66_v24   ;;  %1345 = vmatprep.mubr.msk.f32.mxu0 %vm254_vm1, %v38_v25 }
  0x1a   :  { %1346 = vmatmul.mubr.msk.f32.gmra.mxu0 %vm254_vm1, %v39_v26  ;;  %111 = vperm.xlu0 %1445, %v65_v27  }
  0x1b   :  { %106 = vperm.xlu1 %1446, %v64_v28   ;;  %1348 = vmatprep.mubr.msk.f32.mxu0 %vm254_vm1, %v40_v29 }
  0x1e   :  { %1349 = vmatmul.mubr.msk.f32.gmra.mxu0 %vm254_vm1, %v41_v30  ;;  %101 = vperm.xlu0 %1445, %v63_v31  }
  0x1f   :  { %96 = vperm.xlu1 %1446, %v62_v32   ;;  %1351 = vmatprep.mubr.msk.f32.mxu0 %vm254_vm1, %v42_v33 }
  0x20   :  { %13 = vsyncpa [#allocation4], 0  ;;  %v45_v38 = vld [vmem:[%s2293_s1 + $0x88] sm:$0xff]  ;;  %v90_v40 = vld [vmem:[%s2294_s2 + $0xe0] sm:$0xff]  ;;  %v1470_v23 = vmov 0.0   ;;  %s1471_s18 = smov [#allocation3]  }
  0x21   :  { %v91_v39 = vld [vmem:[%s2294_s2 + $0xe8] sm:$0xff]  ;;  %v46_v41 = vld [vmem:[%s2293_s1 + $0x90] sm:$0xff]  ;;  %v47_v42 = vld [vmem:[%s2293_s1 + $0x98] sm:$0xff]  ;;  %1378 = vmatprep.subr.mxu1 %v1470_v23  ;;  %868 = vmatprep.subr.mxu0 %v1470_v23 }
  0x22   :  { %1352 = vmatmul.mubr.msk.f32.gmra.mxu0 %vm254_vm1, %v43_v34  ;;  %251 = vperm.xlu0 %1445, %v93_v35   ;;  %v89_v43 = vld [vmem:[%s2294_s2 + $0xd8] sm:$0xff]  ;;  %v88_v44 = vld [vmem:[%s2294_s2 + $0xd0] sm:$0xff]  ;;  %v48_v45 = vld [vmem:[%s2293_s1 + $0xa0] sm:$0xff] }
  0x23   :  { %246 = vperm.xlu1 %1446, %v92_v36   ;;  %1354 = vmatprep.mubr.msk.f32.mxu0 %vm254_vm1, %v44_v37  ;;  %v49_v46 = vld [vmem:[%s2293_s1 + $0xa8] sm:$0xff]  ;;  %v86_v48 = vld [vmem:[%s2294_s2 + $0xc0] sm:$0xff]  ;;  %v50_v49 = vld [vmem:[%s2293_s1 + $0xb0] sm:$0xff] }
  0x24   :  { %v87_v47 = vld [vmem:[%s2294_s2 + $0xc8] sm:$0xff]  ;;  %v51_v50 = vld [vmem:[%s2293_s1 + $0xb8] sm:$0xff]  ;;  %v84_v52 = vld [vmem:[%s2294_s2 + $0xb0] sm:$0xff] }
  0x25   :  { %v85_v51 = vld [vmem:[%s2294_s2 + $0xb8] sm:$0xff]  ;;  %v52_v53 = vld [vmem:[%s2293_s1 + $0xc0] sm:$0xff]  ;;  %v53_v54 = vld [vmem:[%s2293_s1 + $0xc8] sm:$0xff] }
  0x26   :  { %1355 = vmatmul.mubr.msk.f32.gmra.mxu0 %vm254_vm1, %v45_v38  ;;  %241 = vperm.xlu0 %1445, %v91_v39   ;;  %v83_v55 = vld [vmem:[%s2294_s2 + $0xa8] sm:$0xff]  ;;  %v82_v56 = vld [vmem:[%s2294_s2 + $0xa0] sm:$0xff]  ;;  %v54_v57 = vld [vmem:[%s2293_s1 + $0xd0] sm:$0xff] }
  0x27   :  { %236 = vperm.xlu1 %1446, %v90_v40   ;;  %1357 = vmatprep.mubr.msk.f32.mxu0 %vm254_vm1, %v46_v41  ;;  %v55_v58 = vld [vmem:[%s2293_s1 + $0xd8] sm:$0xff]  ;;  %v80_v60 = vld [vmem:[%s2294_s2 + $0x90] sm:$0xff]  ;;  %v56_v61 = vld [vmem:[%s2293_s1 + $0xe0] sm:$0xff] }
  0x28   :  { %v81_v59 = vld [vmem:[%s2294_s2 + $0x98] sm:$0xff]  ;;  %v57_v62 = vld [vmem:[%s2293_s1 + $0xe8] sm:$0xff]  ;;  %v78_v0 = vld [vmem:[%s2294_s2 + $0x80] sm:$0xff] }
  0x29   :  { %v79_v63 = vld [vmem:[%s2294_s2 + $0x88] sm:$0xff]  ;;  %v58_v1 = vld [vmem:[%s2293_s1 + $0xf0] sm:$0xff]  ;;  %v59_v2 = vld [vmem:[%s2293_s1 + $0xf8] sm:$0xff]  ;;  %s1216_s1 = sshll.u32 %s1471_s18, 4  ;;  %s1217_s1 = int_to_ptr.vmem [resolvable:$true] %s1216_s1 }
  0x2a   :  { %1358 = vmatmul.mubr.msk.f32.gmra.mxu0 %vm254_vm1, %v47_v42  ;;  %231 = vperm.xlu0 %1445, %v89_v43   ;;  %v707_v3 = vld [vmem:[%s2296_s4 + $0xf8] sm:$0xff]  ;;  %v706_v5 = vld [vmem:[%s2296_s4 + $0xf0] sm:$0xff]  ;;  %v705_v7 = vld [vmem:[%s2296_s4 + $0xe8] sm:$0xff]  ;;  %s1447_s19 = scalar_lea.vmem %s1217_s1, 16  ;;  %s1451_s20 = scalar_lea.vmem %s1217_s1, 32 }
  0x2b   :  { %226 = vperm.xlu1 %1446, %v88_v44   ;;  %1360 = vmatprep.mubr.msk.f32.mxu0 %vm254_vm1, %v48_v45  ;;  %v691_v4 = vld [vmem:[%s2296_s4 + $0x78] sm:$0xff]  ;;  %v690_v6 = vld [vmem:[%s2296_s4 + $0x70] sm:$0xff]  ;;  %v689_v8 = vld [vmem:[%s2296_s4 + $0x68] sm:$0xff]  ;;  %p1448_p0 = scmp.ne.s32.totalorder %s1217_s1, %s1447_s19  ;;  %p1452_p1 = scmp.lt.s32.totalorder %s1217_s1, %s1217_s1 }
  0x2c   :  { %v704_v9 = vld [vmem:[%s2296_s4 + $0xe0] sm:$0xff]  ;;  %v703_v11 = vld [vmem:[%s2296_s4 + $0xd8] sm:$0xff]  ;;  %v702_v13 = vld [vmem:[%s2296_s4 + $0xd0] sm:$0xff]  ;;  %p1453_p2 = scmp.lt.s32.totalorder %s1451_s20, %s1447_s19 }
  0x2d   :  { %v688_v10 = vld [vmem:[%s2296_s4 + $0x60] sm:$0xff]  ;;  %v687_v12 = vld [vmem:[%s2296_s4 + $0x58] sm:$0xff]  ;;  %v686_v14 = vld [vmem:[%s2296_s4 + $0x50] sm:$0xff] }
  0x2e   :  { %1361 = vmatmul.mubr.msk.f32.gmra.mxu0 %vm254_vm1, %v49_v46  ;;  %221 = vperm.xlu0 %1445, %v87_v47   ;;  %v701_v15 = vld [vmem:[%s2296_s4 + $0xc8] sm:$0xff]  ;;  %v700_v17 = vld [vmem:[%s2296_s4 + $0xc0] sm:$0xff]  ;;  %v699_v19 = vld [vmem:[%s2296_s4 + $0xb8] sm:$0xff]  ;;  %p1454_p3 = por %p1453_p2, %p1452_p1 }
  0x2f   :  { %216 = vperm.xlu1 %1446, %v86_v48   ;;  %1363 = vmatprep.mubr.msk.f32.mxu0 %vm254_vm1, %v50_v49  ;;  %v685_v16 = vld [vmem:[%s2296_s4 + $0x48] sm:$0xff]  ;;  %v684_v18 = vld [vmem:[%s2296_s4 + $0x40] sm:$0xff]  ;;  %v683_v20 = vld [vmem:[%s2296_s4 + $0x38] sm:$0xff] }
  0x30   :  { %v698_v21 = vld [vmem:[%s2296_s4 + $0xb0] sm:$0xff]  ;;  %v697_v24 = vld [vmem:[%s2296_s4 + $0xa8] sm:$0xff]  ;;  %v696_v26 = vld [vmem:[%s2296_s4 + $0xa0] sm:$0xff]  ;;  %p1455_p4 = pnand %p1454_p3, %p1448_p0 }
  0x31   :  { %v682_v22 = vld [vmem:[%s2296_s4 + $0x30] sm:$0xff]  ;;  %v681_v25 = vld [vmem:[%s2296_s4 + $0x28] sm:$0xff]  ;;  %v680_v27 = vld [vmem:[%s2296_s4 + $0x20] sm:$0xff] }
  0x32   :  { %1364 = vmatmul.mubr.msk.f32.gmra.mxu0 %vm254_vm1, %v51_v50  ;;  %211 = vperm.xlu0 %1445, %v85_v51   ;;  %v695_v28 = vld [vmem:[%s2296_s4 + $0x98] sm:$0xff]  ;;  %v694_v30 = vld [vmem:[%s2296_s4 + $0x90] sm:$0xff]  ;;  %v693_v32 = vld [vmem:[%s2296_s4 + $0x88] sm:$0xff] }
  0x33   :  { %206 = vperm.xlu1 %1446, %v84_v52   ;;  %1366 = vmatprep.mubr.msk.f32.mxu0 %vm254_vm1, %v52_v53  ;;  %v679_v29 = vld [vmem:[%s2296_s4 + $0x18] sm:$0xff]  ;;  %v678_v31 = vld [vmem:[%s2296_s4 + $0x10] sm:$0xff]  ;;  %v677_v33 = vld [vmem:[%s2296_s4 + $0x8] sm:$0xff] }
  0x34   :  { %v692_v34 = vld [vmem:[%s2296_s4 + $0x80] sm:$0xff]  ;;  %v613_v36 = vld [vmem:[%s2295_s3 + $0x8] sm:$0xff]  ;;  %v643_v37 = vld [vmem:[%s2295_s3 + $0xf8] sm:$0xff] }
  0x35   :  { %v676_v35 = vld [vmem:[%s2296_s4] sm:$0xff]  ;;  %1007 = vmatprep.mubr.f32.mxu1 %v643_v37 }
  0x36   :  { %1367 = vmatmul.mubr.msk.f32.gmra.mxu0 %vm254_vm1, %v53_v54  ;;  %201 = vperm.xlu0 %1445, %v83_v55  }
  0x37   :  { %196 = vperm.xlu1 %1446, %v82_v56   ;;  %1369 = vmatprep.mubr.msk.f32.mxu0 %vm254_vm1, %v54_v57 }
  0x3a   :  { %1370 = vmatmul.mubr.msk.f32.gmra.mxu0 %vm254_vm1, %v55_v58  ;;  %191 = vperm.xlu0 %1445, %v81_v59  }
  0x3b   :  { %186 = vperm.xlu1 %1446, %v80_v60   ;;  %1372 = vmatprep.mubr.msk.f32.mxu0 %vm254_vm1, %v56_v61 }
  0x3e   :  { %1373 = vmatmul.mubr.msk.f32.gmra.mxu0 %vm254_vm1, %v57_v62  ;;  %181 = vperm.xlu0 %1445, %v79_v63  }
  0x3f   :  { %176 = vperm.xlu1 %1446, %v78_v0   ;;  %1375 = vmatprep.mubr.msk.f32.mxu0 %vm254_vm1, %v58_v1 }
  0x42   :  { %1376 = vmatmul.mubr.msk.f32.gmra.mxu0 %vm254_vm1, %v59_v2  ;;  %865 = vperm.xlu0 %1445, %v707_v3  }
  0x43   :  { %785 = vperm.xlu1 %1446, %v691_v4   ;;  %932 = vmatprep.mubr.f32.mxu0 %v613_v36 }
  0x46   :  { %860 = vperm.xlu0 %1445, %v706_v5  }
  0x47   :  { %780 = vperm.xlu1 %1446, %v690_v6  }
  0x4a   :  { %855 = vperm.xlu0 %1445, %v705_v7  }
  0x4b   :  { %775 = vperm.xlu1 %1446, %v689_v8  }
  0x4e   :  { %850 = vperm.xlu0 %1445, %v704_v9  }
  0x4f   :  { %770 = vperm.xlu1 %1446, %v688_v10  }
  0x52   :  { %845 = vperm.xlu0 %1445, %v703_v11  }
  0x53   :  { %765 = vperm.xlu1 %1446, %v687_v12  }
  0x56   :  { %840 = vperm.xlu0 %1445, %v702_v13  }
  0x57   :  { %760 = vperm.xlu1 %1446, %v686_v14  }
  0x5a   :  { %835 = vperm.xlu0 %1445, %v701_v15  }
  0x5b   :  { %755 = vperm.xlu1 %1446, %v685_v16  }
  0x5e   :  { %830 = vperm.xlu0 %1445, %v700_v17  }
  0x5f   :  { %750 = vperm.xlu1 %1446, %v684_v18  }
  0x62   :  { %825 = vperm.xlu0 %1445, %v699_v19  }
  0x63   :  { %745 = vperm.xlu1 %1446, %v683_v20  }
  0x66   :  { %820 = vperm.xlu0 %1445, %v698_v21  }
  0x67   :  { %740 = vperm.xlu1 %1446, %v682_v22  }
  0x6a   :  { %815 = vperm.xlu0 %1445, %v697_v24  }
  0x6b   :  { %735 = vperm.xlu1 %1446, %v681_v25  }
  0x6e   :  { %810 = vperm.xlu0 %1445, %v696_v26  }
  0x6f   :  { %730 = vperm.xlu1 %1446, %v680_v27  }
  0x72   :  { %805 = vperm.xlu0 %1445, %v695_v28  }
  0x73   :  { %725 = vperm.xlu1 %1446, %v679_v29  }
  0x76   :  { %800 = vperm.xlu0 %1445, %v694_v30  }
  0x77   :  { %720 = vperm.xlu1 %1446, %v678_v31  }
  0x7a   :  { %795 = vperm.xlu0 %1445, %v693_v32  }
  0x7b   :  { %715 = vperm.xlu1 %1446, %v677_v33  }
  0x7d   :  { %v172_v38 = vpop.permute.xlu0 %171 }
  0x7e   :  { %790 = vperm.xlu0 %1445, %v692_v34   ;;  %v162_v39 = vpop.permute.xlu1 %161 }
  0x7f   :  { %710 = vperm.xlu1 %1446, %v676_v35  }
  0x81   :  { %v167_v41 = vpop.permute.xlu0 %166 }
  0x82   :  { %v157_v43 = vpop.permute.xlu1 %156 }
  0x85   :  { %v152_v46 = vpop.permute.xlu0 %151 }
  0x86   :  { %v147_v48 = vpop.permute.xlu1 %146 }
  0x89   :  { %v142_v51 = vpop.permute.xlu0 %141 }
  0x8a   :  { %v137_v53 = vpop.permute.xlu1 %136 }
  0x8d   :  { %v132_v56 = vpop.permute.xlu0 %131 }
  0x8e   :  { %v127_v58 = vpop.permute.xlu1 %126 }
  0x91   :  { %v1860_v61 = vpop.permute.xlu0 %121 }
  0x92   :  { %v1862_v63 = vpop.permute.xlu1 %116 }
  0x95   :  { %v1864_v6 = vpop.permute.xlu0 %111 }
  0x96   :  { %v1868_v10 = vpop.permute.xlu1 %106 }
  0x99   :  { %v1878_v17 = vpop.permute.xlu0 %101 }
  0x9a   :  { %v1884_v21 = vpop.permute.xlu1 %96 }
  0x9d   :  { %v1894_v29 = vpop.permute.xlu0 %251 }
  0x9e   :  { %v1901_v33 = vpop.permute.xlu1 %246 }
  0xc6   :  { %v1846_v40 = vpop.f32.mrf.mxu0 }
  0xc8   :  { %v1848_v42 = vpop.f32.mrf.mxu0 }
  0xca   :  { %v1850_v44 = vpop.f32.mrf.mxu0 }
  0xcc   :  { %v1852_v45 = vpop.f32.mrf.mxu0 }
  0xce   :  { %v1854_v47 = vpop.f32.mrf.mxu0 }
  0xcf   :  { %v447_v35 = vadd.f32 %v1854_v47, %v1860_v61 }
  0xd0   :  { %v1856_v49 = vpop.f32.mrf.mxu0 }
  0xd1   :  { %v585_v47 = vmax.f32 %v447_v35, 0.0 }
  0xd2   :  { %v1341_v50 = vpop.f32.mrf.mxu0 }
  0xd3   :  { %v457_v27 = vadd.f32 %v1341_v50, %v132_v56 }
  0xd4   :  { %v1858_v52 = vpop.f32.mrf.mxu0 }
  0xd5   :  { %v452_v31 = vadd.f32 %v1858_v52, %v127_v58  ;;  %v587_v36 = vmax.f32 %v457_v27, 0.0 }
  0xd6   :  { %v1344_v54 = vpop.f32.mrf.mxu0 }
  0xd7   :  { %v467_v19 = vadd.f32 %v1344_v54, %v142_v51 }
  0xd8   :  { %v461_v55 = vpop.f32.mrf.mxu0 }
  0xd9   :  { %v462_v24 = vadd.f32 %v461_v55, %v137_v53  ;;  %v589_v28 = vmax.f32 %v467_v19, 0.0 }
  0xda   :  { %v1347_v57 = vpop.f32.mrf.mxu0 }
  0xdb   :  { %v477_v12 = vadd.f32 %v1347_v57, %v152_v46  ;;  %v588_v32 = vmax.f32 %v462_v24, 0.0  ;;  %v437_v46 = vadd.f32 %v1850_v44, %v1864_v6  ;;  %v427_v44 = vadd.f32 %v1846_v40, %v1878_v17 }
  0xdc   :  { %v471_v59 = vpop.f32.mrf.mxu0 }
  0xdd   :  { %v472_v15 = vadd.f32 %v471_v59, %v147_v48  ;;  %v591_v20 = vmax.f32 %v477_v12, 0.0  ;;  %v237_v48 = vpop.permute.xlu1 %236  ;;  %v583_v53 = vmax.f32 %v437_v46, 0.0  ;;  %v581_v40 = vmax.f32 %v427_v44, 0.0  ;;  %v615_v46 = vld [vmem:[%s2295_s3 + $0x18] sm:$0xff] }
  0xde   :  { %v1350_v60 = vpop.f32.mrf.mxu0  ;;  %v619_v44 = vld [vmem:[%s2295_s3 + $0x38] sm:$0xff] }
  0xdf   :  { %v487_v3 = vadd.f32 %v1350_v60, %v162_v39  ;;  %v590_v25 = vmax.f32 %v472_v15, 0.0  ;;  %v586_v39 = vmax.f32 %v452_v31, 0.0 }
  0xe0   :  { %v481_v62 = vpop.f32.mrf.mxu0 }
  0xe1   :  { %v482_v8 = vadd.f32 %v481_v62, %v157_v43  ;;  %v593_v13 = vmax.f32 %v487_v3, 0.0  ;;  %v227_v57 = vpop.permute.xlu1 %226 }
  0xe2   :  { %v1353_v0 = vpop.f32.mrf.mxu0 }
  0xe3   :  { %v497_v1 = vadd.f32 %v1353_v0, %v172_v38  ;;  %v592_v16 = vmax.f32 %v482_v8, 0.0  ;;  %v442_v38 = vadd.f32 %v1856_v49, %v1862_v63  ;;  %v432_v49 = vadd.f32 %v1852_v45, %v1868_v10 }
  0xe4   :  { %v491_v2 = vpop.f32.mrf.mxu0  ;;  %v422_v45 = vadd.f32 %v1848_v42, %v1884_v21 }
  0xe5   :  { %v595_v4 = vmax.f32 %v497_v1, 0.0  ;;  %v492_v5 = vadd.f32 %v491_v2, %v167_v41  ;;  %v242_v41 = vpop.permute.xlu0 %241  ;;  %v584_v51 = vmax.f32 %v442_v38, 0.0  ;;  %v582_v56 = vmax.f32 %v432_v49, 0.0  ;;  %v217_v2 = vpop.permute.xlu1 %216  ;;  %v647_v49 = vld [vmem:[%s2295_s3 + $0x118] sm:$0xff] }
  0xe6   :  { %v1866_v7 = vpop.f32.mrf.mxu0  ;;  %v580_v60 = vmax.f32 %v422_v45, 0.0  ;;  %v621_v45 = vld [vmem:[%s2295_s3 + $0x48] sm:$0xff] }
  0xe7   :  { %v594_v9 = vmax.f32 %v492_v5, 0.0  ;;  %869 = vmatpush1.msra.mxu0 %v595_v4  ;;  %1410 = vmatpush1.msra.mxu1 %v595_v4 }
  0xe8   :  { %v1870_v11 = vpop.f32.mrf.mxu0  ;;  %870 = vmatprep.subr.mxu0 %v1470_v23  ;;  %1379 = vmatprep.subr.mxu1 %v1470_v23 }
  0xe9   :  { %871 = vmatpush1.msra.mxu0 %v594_v9  ;;  %1411 = vmatpush1.msra.mxu1 %v594_v9  ;;  %v232_v54 = vpop.permute.xlu0 %231  ;;  %v207_v12 = vpop.permute.xlu1 %206 }
  0xea   :  { %v1874_v14 = vpop.f32.mrf.mxu0  ;;  %872 = vmatprep.subr.mxu0 %v1470_v23  ;;  %1380 = vmatprep.subr.mxu1 %v1470_v23 }
  0xeb   :  { %873 = vmatpush1.msra.mxu0 %v593_v13  ;;  %1412 = vmatpush1.msra.mxu1 %v593_v13 }
  0xec   :  { %v1880_v18 = vpop.f32.mrf.mxu0  ;;  %874 = vmatprep.subr.mxu0 %v1470_v23  ;;  %1381 = vmatprep.subr.mxu1 %v1470_v23 }
  0xed   :  { %875 = vmatpush1.msra.mxu0 %v592_v16  ;;  %1413 = vmatpush1.msra.mxu1 %v592_v16  ;;  %v222_v61 = vpop.permute.xlu0 %221  ;;  %v197_v24 = vpop.permute.xlu1 %196 }
  0xee   :  { %v1886_v22 = vpop.f32.mrf.mxu0  ;;  %876 = vmatprep.subr.mxu0 %v1470_v23  ;;  %1382 = vmatprep.subr.mxu1 %v1470_v23 }
  0xef   :  { %877 = vmatpush1.msra.mxu0 %v591_v20  ;;  %1414 = vmatpush1.msra.mxu1 %v591_v20 }
  0xf0   :  { %v1890_v26 = vpop.f32.mrf.mxu0  ;;  %878 = vmatprep.subr.mxu0 %v1470_v23  ;;  %1383 = vmatprep.subr.mxu1 %v1470_v23 }
  0xf1   :  { %879 = vmatpush1.msra.mxu0 %v590_v25  ;;  %1415 = vmatpush1.msra.mxu1 %v590_v25  ;;  %v212_v8 = vpop.permute.xlu0 %211  ;;  %v522_v31 = vadd.f32 %v1890_v26, %v197_v24  ;;  %v665_v24 = vld [vmem:[%s2295_s3 + $0x1a8] sm:$0xff] }
  0xf2   :  { %v1896_v30 = vpop.f32.mrf.mxu0  ;;  %880 = vmatprep.subr.mxu0 %v1470_v23  ;;  %1384 = vmatprep.subr.mxu1 %v1470_v23 }
  0xf3   :  { %881 = vmatpush1.msra.mxu0 %v589_v28  ;;  %1416 = vmatpush1.msra.mxu1 %v589_v28  ;;  %v537_v20 = vadd.f32 %v1896_v30, %v212_v8  ;;  %v600_v26 = vmax.f32 %v522_v31, 0.0  ;;  %v628_v8 = vld [vmem:[%s2295_s3 + $0x80] sm:$0xff]  ;;  %v666_v31 = vld [vmem:[%s2295_s3 + $0x1b0] sm:$0xff] }
  0xf4   :  { %v1903_v34 = vpop.f32.mrf.mxu0  ;;  %882 = vmatprep.subr.mxu0 %v1470_v23  ;;  %1385 = vmatprep.subr.mxu1 %v1470_v23 }
  0xf5   :  { %883 = vmatpush1.msra.mxu0 %v588_v32  ;;  %1417 = vmatpush1.msra.mxu1 %v588_v32  ;;  %v202_v19 = vpop.permute.xlu0 %201  ;;  %v532_v25 = vadd.f32 %v1903_v34, %v207_v12  ;;  %v661_v12 = vld [vmem:[%s2295_s3 + $0x188] sm:$0xff] }
  0xf6   :  { %v1909_v37 = vpop.f32.mrf.mxu0  ;;  %884 = vmatprep.subr.mxu0 %v1470_v23  ;;  %1386 = vmatprep.subr.mxu1 %v1470_v23  ;;  %v527_v28 = vadd.f32 %v1886_v22, %v202_v19  ;;  %v632_v19 = vld [vmem:[%s2295_s3 + $0xa0] sm:$0xff] }
  0xf7   :  { %885 = vmatpush1.msra.mxu0 %v587_v36  ;;  %1418 = vmatpush1.msra.mxu1 %v587_v36  ;;  %v547_v13 = vadd.f32 %v1909_v37, %v222_v61  ;;  %v602_v32 = vmax.f32 %v532_v25, 0.0  ;;  %v625_v61 = vld [vmem:[%s2295_s3 + $0x68] sm:$0xff]  ;;  %v634_v25 = vld [vmem:[%s2295_s3 + $0xb0] sm:$0xff] }
  0xf8   :  { %v1915_v43 = vpop.f32.mrf.mxu0  ;;  %886 = vmatprep.subr.mxu0 %v1470_v23  ;;  %1387 = vmatprep.subr.mxu1 %v1470_v23  ;;  %v601_v34 = vmax.f32 %v527_v28, 0.0  ;;  %v637_v28 = vld [vmem:[%s2295_s3 + $0xc8] sm:$0xff] }
  0xf9   :  { %887 = vmatpush1.msra.mxu0 %v586_v39  ;;  %1419 = vmatpush1.msra.mxu1 %v586_v39  ;;  %v542_v16 = vadd.f32 %v1915_v43, %v217_v2  ;;  %v605_v21 = vmax.f32 %v547_v13, 0.0  ;;  %v192_v30 = vpop.permute.xlu0 %191  ;;  %v642_v43 = vld [vmem:[%s2295_s3 + $0xf0] sm:$0xff]  ;;  %v657_v2 = vld [vmem:[%s2295_s3 + $0x168] sm:$0xff] }
  0xfa   :  { %v1371_v50 = vpop.f32.mrf.mxu0  ;;  %888 = vmatprep.subr.mxu0 %v1470_v23  ;;  %1388 = vmatprep.subr.mxu1 %v1470_v23  ;;  %v517_v22 = vadd.f32 %v1874_v14, %v192_v30  ;;  %v630_v13 = vld [vmem:[%s2295_s3 + $0x90] sm:$0xff]  ;;  %v636_v30 = vld [vmem:[%s2295_s3 + $0xc0] sm:$0xff] }
  0xfb   :  { %889 = vmatpush1.msra.mxu0 %v585_v47  ;;  %1420 = vmatpush1.msra.mxu1 %v585_v47  ;;  %v557_v5 = vadd.f32 %v1371_v50, %v232_v54  ;;  %v604_v27 = vmax.f32 %v542_v16, 0.0  ;;  %v645_v47 = vld [vmem:[%s2295_s3 + $0x108] sm:$0xff]  ;;  %v618_v54 = vld [vmem:[%s2295_s3 + $0x30] sm:$0xff] }
  0xfc   :  { %v551_v52 = vpop.f32.mrf.mxu0  ;;  %890 = vmatprep.subr.mxu0 %v1470_v23  ;;  %1389 = vmatprep.subr.mxu1 %v1470_v23  ;;  %v599_v14 = vmax.f32 %v517_v22, 0.0  ;;  %v617_v50 = vld [vmem:[%s2295_s3 + $0x28] sm:$0xff]  ;;  %v638_v22 = vld [vmem:[%s2295_s3 + $0xd0] sm:$0xff] }
  0xfd   :  { %891 = vmatpush1.msra.mxu0 %v584_v51  ;;  %1421 = vmatpush1.msra.mxu1 %v584_v51  ;;  %v552_v9 = vadd.f32 %v551_v52, %v227_v57  ;;  %v607_v15 = vmax.f32 %v557_v5, 0.0  ;;  %v182_v36 = vpop.permute.xlu0 %181  ;;  %v616_v51 = vld [vmem:[%s2295_s3 + $0x20] sm:$0xff]  ;;  %v646_v52 = vld [vmem:[%s2295_s3 + $0x110] sm:$0xff]  ;;  %v629_v5 = vld [vmem:[%s2295_s3 + $0x88] sm:$0xff] }
  0xfe   :  { %v1374_v55 = vpop.f32.mrf.mxu0  ;;  %892 = vmatprep.subr.mxu0 %v1470_v23  ;;  %1390 = vmatprep.subr.mxu1 %v1470_v23  ;;  %v507_v37 = vadd.f32 %v1866_v7, %v182_v36  ;;  %v620_v57 = vld [vmem:[%s2295_s3 + $0x40] sm:$0xff]  ;;  %v633_v16 = vld [vmem:[%s2295_s3 + $0xa8] sm:$0xff] }
  0xff   :  { %893 = vmatpush1.msra.mxu0 %v583_v53  ;;  %1422 = vmatpush1.msra.mxu1 %v583_v53  ;;  %v567_v63 = vadd.f32 %v1374_v55, %v242_v41  ;;  %v606_v17 = vmax.f32 %v552_v9, 0.0  ;;  %v649_v53 = vld [vmem:[%s2295_s3 + $0x128] sm:$0xff]  ;;  %v648_v55 = vld [vmem:[%s2295_s3 + $0x120] sm:$0xff]  ;;  %v658_v9 = vld [vmem:[%s2295_s3 + $0x170] sm:$0xff] }
 0x100   :  { %v561_v58 = vpop.f32.mrf.mxu0  ;;  %894 = vmatprep.subr.mxu0 %v1470_v23  ;;  %1391 = vmatprep.subr.mxu1 %v1470_v23  ;;  %v597_v41 = vmax.f32 %v507_v37, 0.0  ;;  %v640_v36 = vld [vmem:[%s2295_s3 + $0xe0] sm:$0xff]  ;;  %v670_v37 = vld [vmem:[%s2295_s3 + $0x1d0] sm:$0xff] }
 0x101   :  { %895 = vmatpush1.msra.mxu0 %v582_v56  ;;  %1423 = vmatpush1.msra.mxu1 %v582_v56  ;;  %v562_v3 = vadd.f32 %v561_v58, %v237_v48  ;;  %v609_v6 = vmax.f32 %v567_v63, 0.0  ;;  %v614_v48 = vld [vmem:[%s2295_s3 + $0x10] sm:$0xff]  ;;  %v651_v56 = vld [vmem:[%s2295_s3 + $0x138] sm:$0xff]  ;;  %v624_v63 = vld [vmem:[%s2295_s3 + $0x60] sm:$0xff] }
 0x102   :  { %v1377_v59 = vpop.f32.mrf.mxu0  ;;  %896 = vmatprep.subr.mxu0 %v1470_v23  ;;  %1392 = vmatprep.subr.mxu1 %v1470_v23  ;;  %v650_v58 = vld [vmem:[%s2295_s3 + $0x130] sm:$0xff] }
 0x103   :  { %v577_v42 = vadd.f32 %v1377_v59, %v1894_v29  ;;  %897 = vmatpush1.msra.mxu0 %v581_v40  ;;  %1424 = vmatpush1.msra.mxu1 %v581_v40  ;;  %v608_v10 = vmax.f32 %v562_v3, 0.0  ;;  %v603_v29 = vmax.f32 %v537_v20, 0.0  ;;  %v623_v40 = vld [vmem:[%s2295_s3 + $0x58] sm:$0xff]  ;;  %v653_v59 = vld [vmem:[%s2295_s3 + $0x148] sm:$0xff]  ;;  %v626_v3 = vld [vmem:[%s2295_s3 + $0x70] sm:$0xff] }
 0x104   :  { %v571_v62 = vpop.f32.mrf.mxu0  ;;  %898 = vmatprep.subr.mxu0 %v1470_v23  ;;  %1393 = vmatprep.subr.mxu1 %v1470_v23  ;;  %v662_v20 = vld [vmem:[%s2295_s3 + $0x190] sm:$0xff] }
 0x105   :  { %v611_v0 = vmax.f32 %v577_v42, 0.0  ;;  %v572_v1 = vadd.f32 %v571_v62, %v1901_v33  ;;  %899 = vmatpush1.msra.mxu0 %v580_v60  ;;  %1425 = vmatpush1.msra.mxu1 %v580_v60  ;;  %v187_v33 = vpop.permute.xlu1 %186  ;;  %v622_v60 = vld [vmem:[%s2295_s3 + $0x50] sm:$0xff]  ;;  %v652_v42 = vld [vmem:[%s2295_s3 + $0x140] sm:$0xff]  ;;  %v655_v62 = vld [vmem:[%s2295_s3 + $0x158] sm:$0xff] }
 0x106   :  { %900 = vmatprep.subr.mxu0 %v1470_v23  ;;  %1394 = vmatprep.subr.mxu1 %v1470_v23  ;;  %v512_v35 = vadd.f32 %v1880_v18, %v187_v33  ;;  %v669_v33 = vld [vmem:[%s2295_s3 + $0x1c8] sm:$0xff] }
 0x107   :  { %v610_v4 = vmax.f32 %v572_v1, 0.0  ;;  %901 = vmatpush2.msra.mxu0 %v611_v0  ;;  %1426 = vmatpush2.msra.mxu1 %v611_v0  ;;  %v654_v0 = vld [vmem:[%s2295_s3 + $0x150] sm:$0xff]  ;;  %v627_v1 = vld [vmem:[%s2295_s3 + $0x78] sm:$0xff] }
 0x108   :  { %902 = vmatprep.subr.mxu0 %v1470_v23  ;;  %1395 = vmatprep.subr.mxu1 %v1470_v23  ;;  %v598_v39 = vmax.f32 %v512_v35, 0.0  ;;  %v641_v35 = vld [vmem:[%s2295_s3 + $0xe8] sm:$0xff] }
 0x109   :  { %903 = vmatpush2.msra.mxu0 %v610_v4  ;;  %1427 = vmatpush2.msra.mxu1 %v610_v4  ;;  %v177_v38 = vpop.permute.xlu1 %176  ;;  %v656_v4 = vld [vmem:[%s2295_s3 + $0x160] sm:$0xff] }
 0x10a   :  { %904 = vmatprep.subr.mxu0 %v1470_v23  ;;  %1396 = vmatprep.subr.mxu1 %v1470_v23  ;;  %v502_v18 = vadd.f32 %v1870_v11, %v177_v38  ;;  %v612_v11 = vld [vmem:[%s2295_s3] sm:$0xff] }
 0x10b   :  { %905 = vmatpush2.msra.mxu0 %v609_v6  ;;  %1428 = vmatpush2.msra.mxu1 %v609_v6  ;;  %v659_v6 = vld [vmem:[%s2295_s3 + $0x178] sm:$0xff]  ;;  %v672_v38 = vld [vmem:[%s2295_s3 + $0x1e0] sm:$0xff] }
 0x10c   :  { %906 = vmatprep.subr.mxu0 %v1470_v23  ;;  %1397 = vmatprep.subr.mxu1 %v1470_v23  ;;  %v596_v7 = vmax.f32 %v502_v18, 0.0  ;;  %v675_v18 = vld [vmem:[%s2295_s3 + $0x1f8] sm:$0xff] }
 0x10d   :  { %907 = vmatpush2.msra.mxu0 %v608_v10  ;;  %1429 = vmatpush2.msra.mxu1 %v608_v10  ;;  %v631_v10 = vld [vmem:[%s2295_s3 + $0x98] sm:$0xff] }
 0x10e   :  { %908 = vmatprep.subr.mxu0 %v1470_v23  ;;  %1398 = vmatprep.subr.mxu1 %v1470_v23 }
 0x10f   :  { %909 = vmatpush2.msra.mxu0 %v607_v15  ;;  %1430 = vmatpush2.msra.mxu1 %v607_v15  ;;  %v660_v15 = vld [vmem:[%s2295_s3 + $0x180] sm:$0xff] }
 0x110   :  { %910 = vmatprep.subr.mxu0 %v1470_v23  ;;  %1399 = vmatprep.subr.mxu1 %v1470_v23 }
 0x111   :  { %911 = vmatpush2.msra.mxu0 %v606_v17  ;;  %1431 = vmatpush2.msra.mxu1 %v606_v17  ;;  %v663_v17 = vld [vmem:[%s2295_s3 + $0x198] sm:$0xff] }
 0x112   :  { %912 = vmatprep.subr.mxu0 %v1470_v23  ;;  %1400 = vmatprep.subr.mxu1 %v1470_v23 }
 0x113   :  { %913 = vmatpush2.msra.mxu0 %v605_v21  ;;  %1432 = vmatpush2.msra.mxu1 %v605_v21  ;;  %v635_v21 = vld [vmem:[%s2295_s3 + $0xb8] sm:$0xff] }
 0x114   :  { %914 = vmatprep.subr.mxu0 %v1470_v23  ;;  %1401 = vmatprep.subr.mxu1 %v1470_v23 }
 0x115   :  { %915 = vmatpush2.msra.mxu0 %v604_v27  ;;  %1433 = vmatpush2.msra.mxu1 %v604_v27  ;;  %v664_v27 = vld [vmem:[%s2295_s3 + $0x1a0] sm:$0xff] }
 0x116   :  { %916 = vmatprep.subr.mxu0 %v1470_v23  ;;  %1402 = vmatprep.subr.mxu1 %v1470_v23 }
 0x117   :  { %917 = vmatpush2.msra.mxu0 %v603_v29  ;;  %1434 = vmatpush2.msra.mxu1 %v603_v29  ;;  %v667_v29 = vld [vmem:[%s2295_s3 + $0x1b8] sm:$0xff] }
 0x118   :  { %918 = vmatprep.subr.mxu0 %v1470_v23  ;;  %1403 = vmatprep.subr.mxu1 %v1470_v23 }
 0x119   :  { %919 = vmatpush2.msra.mxu0 %v602_v32  ;;  %1435 = vmatpush2.msra.mxu1 %v602_v32  ;;  %v639_v32 = vld [vmem:[%s2295_s3 + $0xd8] sm:$0xff] }
 0x11a   :  { %920 = vmatprep.subr.mxu0 %v1470_v23  ;;  %1404 = vmatprep.subr.mxu1 %v1470_v23 }
 0x11b   :  { %921 = vmatpush2.msra.mxu0 %v601_v34  ;;  %1436 = vmatpush2.msra.mxu1 %v601_v34  ;;  %v668_v34 = vld [vmem:[%s2295_s3 + $0x1c0] sm:$0xff] }
 0x11c   :  { %922 = vmatprep.subr.mxu0 %v1470_v23  ;;  %1405 = vmatprep.subr.mxu1 %v1470_v23 }
 0x11d   :  { %923 = vmatpush2.msra.mxu0 %v600_v26  ;;  %1437 = vmatpush2.msra.mxu1 %v600_v26  ;;  %v671_v26 = vld [vmem:[%s2295_s3 + $0x1d8] sm:$0xff] }
 0x11e   :  { %924 = vmatprep.subr.mxu0 %v1470_v23  ;;  %1406 = vmatprep.subr.mxu1 %v1470_v23 }
 0x11f   :  { %925 = vmatpush2.msra.mxu0 %v599_v14  ;;  %1438 = vmatpush2.msra.mxu1 %v599_v14  ;;  %v673_v14 = vld [vmem:[%s2295_s3 + $0x1e8] sm:$0xff] }
 0x120   :  { %926 = vmatprep.subr.mxu0 %v1470_v23  ;;  %1407 = vmatprep.subr.mxu1 %v1470_v23 }
 0x121   :  { %927 = vmatpush2.msra.mxu0 %v598_v39  ;;  %1439 = vmatpush2.msra.mxu1 %v598_v39  ;;  %v674_v39 = vld [vmem:[%s2295_s3 + $0x1f0] sm:$0xff] }
 0x122   :  { %928 = vmatprep.subr.mxu0 %v1470_v23  ;;  %1408 = vmatprep.subr.mxu1 %v1470_v23 }
 0x123   :  { %929 = vmatpush2.msra.mxu0 %v597_v41  ;;  %1440 = vmatpush2.msra.mxu1 %v597_v41  ;;  %v1129_v41 = vlaneseq }
 0x124   :  { %930 = vmatprep.subr.mxu0 %v1470_v23  ;;  %1409 = vmatprep.subr.mxu1 %v1470_v23  ;;  %v644_v23 = vld [vmem:[%s2295_s3 + $0x100] sm:$0xff] }
 0x125   :  { %931 = vmatpush2.msra.mxu0 %v596_v7  ;;  %1441 = vmatpush2.msra.mxu1 %v596_v7  ;;  %v1130_v7 = vshrl.u32 %v1129_v41, 7 }
 0x126   :  { %933 = vmatmul.mubr.f32.vlgmr.msra.gmra.mxu0 %v612_v11  ;;  %1008 = vmatmul.mubr.f32.vlgmr.msra.gmra.mxu1 %v642_v43  ;;  %v1125_v43 = vld [vmem:[%s2297_s5] sm:$0x3] }
 0x127   :  { %937 = vmatprep.mubr.f32.mxu0 %v615_v46  ;;  %1012 = vmatprep.mubr.f32.mxu1 %v645_v47  ;;  %v1135_v11 = vsub.s32 1, %v1130_v7  ;;  %v1131_v46 = vsub.s32 0, %v1130_v7 }
 0x129   :  { %v1136_v47 = vrot.slane %v1125_v43, %v1135_v11 }
 0x12a   :  { %938 = vmatmul.mubr.f32.gmra.mxu0 %v614_v48  ;;  %1013 = vmatmul.mubr.f32.gmra.mxu1 %v644_v23  ;;  %v2172_v48 = vrot.slane %v1125_v43, %v1131_v46 }
 0x12b   :  { %942 = vmatprep.mubr.f32.mxu0 %v617_v50  ;;  %1017 = vmatprep.mubr.f32.mxu1 %v647_v49  ;;  %v2178_v49 = vpop.permute.xlu0 %865 }
 0x12c   :  { %2300 = vst [vmem:[#allocation6_spill] sm:$0xff] %v2172_v48 }
 0x12e   :  { %943 = vmatmul.mubr.f32.gmra.mxu0 %v616_v51  ;;  %1018 = vmatmul.mubr.f32.gmra.mxu1 %v646_v52 }
 0x12f   :  { %947 = vmatprep.mubr.f32.mxu0 %v619_v44  ;;  %1022 = vmatprep.mubr.f32.mxu1 %v649_v53  ;;  %v2180_v44 = vpop.permute.xlu1 %785 }
 0x132   :  { %948 = vmatmul.mubr.f32.gmra.mxu0 %v618_v54  ;;  %1023 = vmatmul.mubr.f32.gmra.mxu1 %v648_v55 }
 0x133   :  { %952 = vmatprep.mubr.f32.mxu0 %v621_v45  ;;  %1027 = vmatprep.mubr.f32.mxu1 %v651_v56  ;;  %v2186_v56 = vpop.permute.xlu0 %860 }
 0x136   :  { %953 = vmatmul.mubr.f32.gmra.mxu0 %v620_v57  ;;  %1028 = vmatmul.mubr.f32.gmra.mxu1 %v650_v58 }
 0x137   :  { %957 = vmatprep.mubr.f32.mxu0 %v623_v40  ;;  %1032 = vmatprep.mubr.f32.mxu1 %v653_v59  ;;  %v2192_v40 = vpop.permute.xlu1 %780 }
 0x13a   :  { %958 = vmatmul.mubr.f32.gmra.mxu0 %v622_v60  ;;  %1033 = vmatmul.mubr.f32.gmra.mxu1 %v652_v42 }
 0x13b   :  { %962 = vmatprep.mubr.f32.mxu0 %v625_v61  ;;  %1037 = vmatprep.mubr.f32.mxu1 %v655_v62  ;;  %v2198_v62 = vpop.permute.xlu0 %855 }
 0x13e   :  { %963 = vmatmul.mubr.f32.gmra.mxu0 %v624_v63  ;;  %1038 = vmatmul.mubr.f32.gmra.mxu1 %v654_v0 }
 0x13f   :  { %967 = vmatprep.mubr.f32.mxu0 %v627_v1  ;;  %1042 = vmatprep.mubr.f32.mxu1 %v657_v2  ;;  %v2200_v1 = vpop.permute.xlu1 %775 }
 0x142   :  { %968 = vmatmul.mubr.f32.gmra.mxu0 %v626_v3  ;;  %1043 = vmatmul.mubr.f32.gmra.mxu1 %v656_v4 }
 0x143   :  { %972 = vmatprep.mubr.f32.mxu0 %v629_v5  ;;  %1047 = vmatprep.mubr.f32.mxu1 %v659_v6  ;;  %v2206_v6 = vpop.permute.xlu0 %850 }
 0x146   :  { %973 = vmatmul.mubr.f32.gmra.mxu0 %v628_v8  ;;  %1048 = vmatmul.mubr.f32.gmra.mxu1 %v658_v9 }
 0x147   :  { %977 = vmatprep.mubr.f32.mxu0 %v631_v10  ;;  %1052 = vmatprep.mubr.f32.mxu1 %v661_v12  ;;  %v2212_v10 = vpop.permute.xlu1 %770 }
 0x14a   :  { %978 = vmatmul.mubr.f32.gmra.mxu0 %v630_v13  ;;  %1053 = vmatmul.mubr.f32.gmra.mxu1 %v660_v15 }
 0x14b   :  { %982 = vmatprep.mubr.f32.mxu0 %v633_v16  ;;  %1057 = vmatprep.mubr.f32.mxu1 %v663_v17  ;;  %v2218_v17 = vpop.permute.xlu0 %845 }
 0x14e   :  { %983 = vmatmul.mubr.f32.gmra.mxu0 %v632_v19  ;;  %1058 = vmatmul.mubr.f32.gmra.mxu1 %v662_v20 }
 0x14f   :  { %987 = vmatprep.mubr.f32.mxu0 %v635_v21  ;;  %1062 = vmatprep.mubr.f32.mxu1 %v665_v24  ;;  %v2220_v21 = vpop.permute.xlu1 %765 }
 0x152   :  { %988 = vmatmul.mubr.f32.gmra.mxu0 %v634_v25  ;;  %1063 = vmatmul.mubr.f32.gmra.mxu1 %v664_v27 }
 0x153   :  { %992 = vmatprep.mubr.f32.mxu0 %v637_v28  ;;  %1067 = vmatprep.mubr.f32.mxu1 %v667_v29  ;;  %v2226_v29 = vpop.permute.xlu0 %840 }
 0x156   :  { %993 = vmatmul.mubr.f32.gmra.mxu0 %v636_v30  ;;  %1068 = vmatmul.mubr.f32.gmra.mxu1 %v666_v31 }
 0x157   :  { %997 = vmatprep.mubr.f32.mxu0 %v639_v32  ;;  %1072 = vmatprep.mubr.f32.mxu1 %v669_v33  ;;  %v2232_v32 = vpop.permute.xlu1 %760 }
 0x15a   :  { %998 = vmatmul.mubr.f32.gmra.mxu0 %v638_v22  ;;  %1073 = vmatmul.mubr.f32.gmra.mxu1 %v668_v34 }
 0x15b   :  { %1002 = vmatprep.mubr.f32.mxu0 %v641_v35  ;;  %1077 = vmatprep.mubr.f32.mxu1 %v671_v26  ;;  %v2238_v26 = vpop.permute.xlu0 %835 }
 0x15e   :  { %1003 = vmatmul.mubr.f32.gmra.mxu0 %v640_v36  ;;  %1078 = vmatmul.mubr.f32.gmra.mxu1 %v670_v37 }
 0x15f   :  { %1082 = vmatprep.mubr.f32.mxu1 %v673_v14  ;;  %1203 = vmatprep.mubr.f32.mxu0 %v1136_v47  ;;  %v2240_v14 = vpop.permute.xlu1 %755  ;;  %v2242_v7 = vpop.permute.xlu0 %830 }
 0x162   :  { %1083 = vmatmul.mubr.f32.gmra.mxu1 %v672_v38 }
 0x163   :  { %1087 = vmatprep.mubr.f32.mxu1 %v675_v18  ;;  %v2244_v46 = vpop.permute.xlu1 %750 }
 0x166   :  { %1088 = vmatmul.mubr.f32.gmra.mxu1 %v674_v39 }
 0x1e6   :  { %v2174_v23 = vpop.f32.mrf.mxu0  ;;  %v2176_v50 = vpop.f32.mrf.mxu1 }
 0x1e7   :  { %2301 = vst [vmem:[#allocation7_spill] sm:$0xff] %v2174_v23 }
 0x1e8   :  { %v936_v51 = vpop.f32.mrf.mxu0  ;;  %v1011_v52 = vpop.f32.mrf.mxu1 }
 0x1ea   :  { %v2182_v53 = vpop.f32.mrf.mxu0  ;;  %v2184_v54 = vpop.f32.mrf.mxu1 }
 0x1eb   :  { %2302 = vst [vmem:[#allocation8_spill] sm:$0xff] %v2182_v53  ;;  %2303 = vst [vmem:[#allocation9_spill] sm:$0xff] %v2184_v54 }
 0x1ec   :  { %v941_v55 = vpop.f32.mrf.mxu0  ;;  %v1016_v45 = vpop.f32.mrf.mxu1 }
 0x1ed   :  { %v826_v45 = vpop.permute.xlu0 %825 }
 0x1ee   :  { %v2188_v57 = vpop.f32.mrf.mxu0  ;;  %v2190_v58 = vpop.f32.mrf.mxu1 }
 0x1f0   :  { %v946_v59 = vpop.f32.mrf.mxu0  ;;  %v1021_v60 = vpop.f32.mrf.mxu1 }
 0x1f2   :  { %v2194_v42 = vpop.f32.mrf.mxu0  ;;  %v2196_v61 = vpop.f32.mrf.mxu1 }
 0x1f4   :  { %v951_v63 = vpop.f32.mrf.mxu0  ;;  %v1026_v0 = vpop.f32.mrf.mxu1 }
 0x1f5   :  { %v2246_v63 = vpop.permute.xlu1 %745 }
 0x1f6   :  { %v2202_v2 = vpop.f32.mrf.mxu0  ;;  %v2204_v3 = vpop.f32.mrf.mxu1 }
 0x1f8   :  { %v956_v4 = vpop.f32.mrf.mxu0  ;;  %v1031_v5 = vpop.f32.mrf.mxu1 }
 0x1fa   :  { %v2208_v8 = vpop.f32.mrf.mxu0  ;;  %v2210_v9 = vpop.f32.mrf.mxu1 }
 0x1fc   :  { %v961_v12 = vpop.f32.mrf.mxu0  ;;  %v1036_v13 = vpop.f32.mrf.mxu1 }
 0x1fd   :  { %v821_v13 = vpop.permute.xlu0 %820 }
 0x1fe   :  { %v2214_v15 = vpop.f32.mrf.mxu0  ;;  %v2216_v16 = vpop.f32.mrf.mxu1 }
 0x200   :  { %v966_v19 = vpop.f32.mrf.mxu0  ;;  %v1041_v20 = vpop.f32.mrf.mxu1 }
 0x202   :  { %v2222_v24 = vpop.f32.mrf.mxu0  ;;  %v2224_v25 = vpop.f32.mrf.mxu1 }
 0x204   :  { %v971_v27 = vpop.f32.mrf.mxu0  ;;  %v1046_v28 = vpop.f32.mrf.mxu1 }
 0x205   :  { %v741_v27 = vpop.permute.xlu1 %740 }
 0x206   :  { %v2228_v30 = vpop.f32.mrf.mxu0  ;;  %v2230_v31 = vpop.f32.mrf.mxu1 }
 0x208   :  { %v976_v33 = vpop.f32.mrf.mxu0  ;;  %v1051_v22 = vpop.f32.mrf.mxu1 }
 0x20a   :  { %v2234_v34 = vpop.f32.mrf.mxu0  ;;  %v2236_v35 = vpop.f32.mrf.mxu1 }
 0x20c   :  { %v981_v36 = vpop.f32.mrf.mxu0  ;;  %v1056_v37 = vpop.f32.mrf.mxu1 }
 0x20d   :  { %v816_v36 = vpop.permute.xlu0 %815 }
 0x20e   :  { %v984_v38 = vpop.f32.mrf.mxu0  ;;  %v1059_v18 = vpop.f32.mrf.mxu1 }
 0x210   :  { %v986_v39 = vpop.f32.mrf.mxu0  ;;  %v1061_v41 = vpop.f32.mrf.mxu1 }
 0x211   :  { %v736_v39 = vpop.permute.xlu1 %735  ;;  %v1010_v41 = vadd.f32 %v2176_v50, %v2180_v44 }
 0x212   :  { %v989_v11 = vpop.f32.mrf.mxu0  ;;  %v1064_v43 = vpop.f32.mrf.mxu1 }
 0x214   :  { %v991_v47 = vpop.f32.mrf.mxu0  ;;  %v1066_v51 = vpop.f32.mrf.mxu1 }
 0x216   :  { %v994_v52 = vpop.f32.mrf.mxu0  ;;  %v1069_v55 = vpop.f32.mrf.mxu1 }
 0x217   :  { %v995_v50 = vadd.f32 %v994_v52, %v2212_v10  ;;  %v1060_v52 = vadd.f32 %v1059_v18, %v2238_v26 }
 0x218   :  { %v996_v59 = vpop.f32.mrf.mxu0  ;;  %v1071_v60 = vpop.f32.mrf.mxu1 }
 0x219   :  { %v1118_v26 = vmax.f32 %v1060_v52, 0.0 }
 0x21a   :  { %v999_v0 = vpop.f32.mrf.mxu0  ;;  %v1074_v4 = vpop.f32.mrf.mxu1 }
 0x21b   :  { %v1000_v23 = vadd.f32 %v999_v0, %v2200_v1  ;;  %v1075_v54 = vadd.f32 %v1074_v4, %v2206_v6  ;;  %v985_v6 = vadd.f32 %v984_v38, %v2232_v32  ;;  %v1050_v32 = vadd.f32 %v2230_v31, %v826_v45 }
 0x21c   :  { %v1001_v5 = vpop.f32.mrf.mxu0  ;;  %v1076_v12 = vpop.f32.mrf.mxu1 }
 0x21d   :  { %v1121_v1 = vmax.f32 %v1075_v54, 0.0  ;;  %v1116_v31 = vmax.f32 %v1050_v32, 0.0 }
 0x21e   :  { %v1004_v19 = vpop.f32.mrf.mxu0  ;;  %v1079_v20 = vpop.f32.mrf.mxu1 }
 0x21f   :  { %v1005_v60 = vadd.f32 %v1004_v19, %v2192_v40  ;;  %v1080_v12 = vadd.f32 %v1079_v20, %v2198_v62  ;;  %v990_v40 = vadd.f32 %v989_v11, %v2220_v21  ;;  %v1106_v62 = vmax.f32 %v1000_v23, 0.0 }
 0x220   :  { %v1081_v28 = vpop.f32.mrf.mxu1  ;;  %v1006_v33 = vpop.f32.mrf.mxu0  ;;  %v1065_v19 = vadd.f32 %v1064_v43, %v2226_v29  ;;  %v1055_v23 = vadd.f32 %v2236_v35, %v2242_v7  ;;  %v975_v21 = vadd.f32 %v2228_v30, %v2244_v46  ;;  %v1103_v29 = vmax.f32 %v985_v6, 0.0 }
 0x221   :  { %v811_v28 = vpop.permute.xlu0 %810  ;;  %v1108_v33 = vmax.f32 %v1010_v41, 0.0  ;;  %v1107_v44 = vmax.f32 %v1005_v60, 0.0  ;;  %v1045_v35 = vadd.f32 %v2224_v25, %v821_v13  ;;  %v965_v11 = vadd.f32 %v2214_v15, %v741_v27  ;;  %v2305_v60 = vld [vmem:[#allocation9_spill] sm:$0xff] }
 0x222   :  { %v1084_v22 = vpop.f32.mrf.mxu1  ;;  %v1119_v54 = vmax.f32 %v1065_v19, 0.0  ;;  %v1117_v7 = vmax.f32 %v1055_v23, 0.0  ;;  %v1101_v30 = vmax.f32 %v975_v21, 0.0  ;;  %v1040_v43 = vadd.f32 %v2216_v16, %v816_v36 }
 0x223   :  { %v1085_v51 = vadd.f32 %v1084_v22, %v2186_v56  ;;  %v1122_v56 = vmax.f32 %v1080_v12, 0.0  ;;  %v960_v46 = vadd.f32 %v2208_v8, %v736_v39  ;;  %v1115_v45 = vmax.f32 %v1045_v35, 0.0 }
 0x224   :  { %v1086_v37 = vpop.f32.mrf.mxu1  ;;  %v1099_v13 = vmax.f32 %v965_v11, 0.0  ;;  %v1114_v27 = vmax.f32 %v1040_v43, 0.0 }
 0x225   :  { %v731_v37 = vpop.permute.xlu1 %730  ;;  %v1123_v53 = vmax.f32 %v1085_v51, 0.0  ;;  %v806_v0 = vpop.permute.xlu0 %805  ;;  %v1098_v22 = vmax.f32 %v960_v46, 0.0 }
 0x226   :  { %v1089_v47 = vpop.f32.mrf.mxu1  ;;  %v955_v25 = vadd.f32 %v2202_v2, %v731_v37  ;;  %v1030_v20 = vadd.f32 %v2204_v3, %v806_v0  ;;  %v2304_v3 = vld [vmem:[#allocation8_spill] sm:$0xff] }
 0x227   :  { %v1090_v59 = vadd.f32 %v1089_v47, %v2178_v49  ;;  %v1070_v49 = vadd.f32 %v1069_v55, %v2218_v17  ;;  %v1104_v17 = vmax.f32 %v990_v40, 0.0  ;;  %v1127_v40 = vstv %s2298_s6 }
 0x228   :  { %v1091_v5 = vpop.f32.mrf.mxu1  ;;  %v1097_v39 = vmax.f32 %v955_v25, 0.0  ;;  %v1112_v41 = vmax.f32 %v1030_v20, 0.0 }
 0x229   :  { %v1124_v48 = vmax.f32 %v1090_v59, 0.0  ;;  %v726_v10 = vpop.permute.xlu1 %725  ;;  %v1120_v4 = vmax.f32 %v1070_v49, 0.0  ;;  %v801_v38 = vpop.permute.xlu0 %800 }
 0x22a   :  { %v950_v16 = vadd.f32 %v2194_v42, %v726_v10  ;;  %v1025_v8 = vadd.f32 %v2196_v61, %v801_v38  ;;  %v2306_v61 = vld [vmem:[#allocation7_spill] sm:$0xff] }
 0x22b   :  { %1291 = vmatprep.subr.mxu0 %v1124_v48  ;;  %v1105_v48 = vmax.f32 %v995_v50, 0.0 }
 0x22c   :  { %1292 = vmatpush3.msra.mxu0 %v1108_v33  ;;  %v1096_v59 = vmax.f32 %v950_v16, 0.0  ;;  %v1111_v12 = vmax.f32 %v1025_v8, 0.0 }
 0x22d   :  { %1293 = vmatprep.subr.mxu0 %v1123_v53  ;;  %v980_v53 = vadd.f32 %v2234_v34, %v2240_v14  ;;  %v970_v34 = vadd.f32 %v2222_v24, %v2246_v63  ;;  %v721_v18 = vpop.permute.xlu1 %720  ;;  %v1035_v24 = vadd.f32 %v2210_v9, %v811_v28  ;;  %v796_v63 = vpop.permute.xlu0 %795 }
 0x22e   :  { %1294 = vmatpush3.msra.mxu0 %v1107_v44  ;;  %v945_v9 = vadd.f32 %v2188_v57, %v721_v18  ;;  %v1020_v2 = vadd.f32 %v2190_v58, %v796_v63  ;;  %v2307_v44 = vld [vmem:[#allocation6_spill] sm:$0xff] }
 0x22f   :  { %1295 = vmatprep.subr.mxu0 %v1122_v56  ;;  %v1102_v14 = vmax.f32 %v980_v53, 0.0  ;;  %v1100_v55 = vmax.f32 %v970_v34, 0.0  ;;  %v1113_v36 = vmax.f32 %v1035_v24, 0.0 }
 0x230   :  { %1296 = vmatpush3.msra.mxu0 %v1106_v62  ;;  %v1095_v33 = vmax.f32 %v945_v9, 0.0  ;;  %v1110_v57 = vmax.f32 %v1020_v2, 0.0 }
 0x231   :  { %1297 = vmatprep.subr.mxu0 %v1121_v1  ;;  %v716_v15 = vpop.permute.xlu1 %715  ;;  %v791_v47 = vpop.permute.xlu0 %790 }
 0x232   :  { %1298 = vmatpush3.msra.mxu0 %v1105_v48  ;;  %v940_v51 = vadd.f32 %v2304_v3, %v716_v15  ;;  %v1015_v5 = vadd.f32 %v2305_v60, %v791_v47 }
 0x233   :  { %1299 = vmatprep.subr.mxu0 %v1120_v4 }
 0x234   :  { %1300 = vmatpush3.msra.mxu0 %v1104_v17  ;;  %v1094_v37 = vmax.f32 %v940_v51, 0.0  ;;  %v1109_v58 = vmax.f32 %v1015_v5, 0.0 }
 0x235   :  { %1301 = vmatprep.subr.mxu0 %v1119_v54  ;;  %v711_v42 = vpop.permute.xlu1 %710 }
 0x236   :  { %1302 = vmatpush3.msra.mxu0 %v1103_v29  ;;  %v935_v28 = vadd.f32 %v2306_v61, %v711_v42 }
 0x237   :  { %1303 = vmatprep.subr.mxu0 %v1118_v26 }
 0x238   :  { %1304 = vmatpush3.msra.mxu0 %v1102_v14  ;;  %v1093_v50 = vmax.f32 %v935_v28, 0.0 }
 0x239   :  { %1305 = vmatprep.subr.mxu0 %v1117_v7 }
 0x23a   :  { %1306 = vmatpush3.msra.mxu0 %v1101_v30 }
 0x23b   :  { %1307 = vmatprep.subr.mxu0 %v1116_v31 }
 0x23c   :  { %1308 = vmatpush3.msra.mxu0 %v1100_v55 }
 0x23d   :  { %1309 = vmatprep.subr.mxu0 %v1115_v45 }
 0x23e   :  { %1310 = vmatpush3.msra.mxu0 %v1099_v13 }
 0x23f   :  { %1311 = vmatprep.subr.mxu0 %v1114_v27 }
 0x240   :  { %1312 = vmatpush3.msra.mxu0 %v1098_v22 }
 0x241   :  { %1313 = vmatprep.subr.mxu0 %v1113_v36 }
 0x242   :  { %1314 = vmatpush3.msra.mxu0 %v1097_v39 }
 0x243   :  { %1315 = vmatprep.subr.mxu0 %v1112_v41 }
 0x244   :  { %1316 = vmatpush3.msra.mxu0 %v1096_v59 }
 0x245   :  { %1317 = vmatprep.subr.mxu0 %v1111_v12 }
 0x246   :  { %1318 = vmatpush3.msra.mxu0 %v1095_v33 }
 0x247   :  { %1319 = vmatprep.subr.mxu0 %v1110_v57 }
 0x248   :  { %1320 = vmatpush3.msra.mxu0 %v1094_v37 }
 0x249   :  { %1321 = vmatprep.subr.mxu0 %v1109_v58 }
 0x24a   :  { %1322 = vmatpush3.msra.mxu0 %v1093_v50 }
 0x24b   :  { %1204 = vmatmul.mubr.f32.vlgmr.msra.gmra.mxu0 %v2307_v44 }
 0x30b   :  { %v1323_v49 = vpop.f32.mrf.mxu0 }
 0x30d   :  { %v1324_v56 = vpop.f32.mrf.mxu0 }
 0x30e   :  { %v1325_v62 = vadd.f32 %v1324_v56, %v1323_v49 }
 0x310   :  { %v1206_v19 = vadd.f32 %v1325_v62, %v1127_v40 }
 0x312   :  { %1209 = vst [vmem:[#allocation3] sm:$0x1] %v1206_v19 }
 0x313   :  { %1458 = shalt.err (!%p1455_p4)
}
 0x314   :  { %1219 = dma.vmem_to_hbm [thread:$0]  %s1217_s1, 16, %s2299_s7, [#allocation4]  }
 0x315   :  { %1467 = dma.done.wait [#allocation4], 16  }
 0x316   :  { %1468 = vsyncadd [#allocation4], 4294967280 }
 0x317   :  { %1223 = vsyncpa [#allocation4], 1 }

</bundles_post_ra>
